<compile_context>
chip_gen: v7x
topology: tpu7x:2x2x1
jax: 0.10.0
libtpu: 0.0.40
codegen_flags: <defaults>
</compile_context>

<pallas_src>
import jax
import jax.numpy as jnp
from jax.experimental import pallas as pl
from jax.experimental.pallas import tpu as pltpu


def _round_up(x, m):
    return ((x + m - 1) // m) * m


def _mask_lm_head_kernel(h_ref, w_ref, b_ref, sum_ref, lse_ref, m_scr, s_scr):
    """One V-tile of the lm-head matmul over the gathered <mask> rows.

    h_ref   : (M, H)   bf16  gathered mask-position hidden rows (resident across tiles)
    w_ref   : (H, TV)  bf16  lm_head weight tile (streamed over V)
    b_ref   : (1, TV)  f32   lm_head bias tile
    sum_ref : (B, TV)  f32   out: per-batch sum over mask rows of RAW logits
    lse_ref : (B, 1)   f32   out: per-batch sum over mask rows of logsumexp
                             (accumulator block, written on the last V tile)
    m_scr   : (M, 1)   f32   scratch: running per-row max
    s_scr   : (M, 1)   f32   scratch: running per-row sum-exp (scaled to m_scr)
    """
    j = pl.program_id(0)

    @pl.when(j == 0)
    def _init():
        m_scr[...] = jnp.full_like(m_scr, -jnp.inf)
        s_scr[...] = jnp.zeros_like(s_scr)

    # MXU matmul, f32 accumulation.
    logits = jnp.dot(h_ref[...], w_ref[...],
                     preferred_element_type=jnp.float32) + b_ref[...]   # (M, TV) f32

    # Online (streaming) logsumexp per mask row across V tiles.
    tile_max = jnp.max(logits, axis=-1, keepdims=True)                  # (M, 1)
    m_new = jnp.maximum(m_scr[...], tile_max)
    s_scr[...] = (s_scr[...] * jnp.exp(m_scr[...] - m_new)
                  + jnp.sum(jnp.exp(logits - m_new), axis=-1, keepdims=True))
    m_scr[...] = m_new

    m_rows = h_ref.shape[0]
    batch = sum_ref.shape[0]
    mask_num = m_rows // batch
    tv = w_ref.shape[1]

    # Per-batch sum of the raw logits over the mask rows for this V tile.
    if mask_num == 1:
        sum_ref[...] = logits
    else:
        sum_ref[...] = jnp.sum(logits.reshape(batch, mask_num, tv), axis=1)

    @pl.when(j == pl.num_programs(0) - 1)
    def _finalize():
        lse = m_scr[...] + jnp.log(s_scr[...])                          # (M, 1)
        if mask_num == 1:
            lse_ref[...] = lse
        else:
            lse_ref[...] = jnp.sum(lse.reshape(batch, mask_num, 1), axis=1)


def masked_logsoftmax_sum(hidden_rows, lm_w, lm_b, batch, *, tv_max=2048):
    """mask_logits[b, v] = sum over mask rows r of b of log_softmax(h[r] @ W + bias)[v].

    hidden_rows : (M, H) with M = batch * mask_num, rows grouped batch-major.
    lm_w        : (H, V),  lm_b : (V,)
    Returns (batch, V) f32.
    """
    M, H = hidden_rows.shape
    V = lm_w.shape[1]
    assert M % batch == 0

    # Lane-aligned V tile.  tv_max ~2048 fits comfortably in 32 MiB scoped VMEM
    # with bf16 weights double-buffered on v5e/v6e/v7x (H=1024: 4 MiB/tile).
    tv = min(tv_max, _round_up(V, 128))
    v_pad = _round_up(V, tv)

    w = lm_w.astype(jnp.bfloat16)
    b = lm_b.astype(jnp.float32).reshape(1, V)
    if v_pad != V:
        # Padded vocab columns: zero weight + very negative bias so they do not
        # perturb the logsumexp; they are sliced away before the verbalizer gather.
        w = jnp.pad(w, ((0, 0), (0, v_pad - V)))
        b = jnp.pad(b, ((0, 0), (0, v_pad - V)), constant_values=-1e30)
    h = hidden_rows.astype(jnp.bfloat16)

    grid = (v_pad // tv,)
    sum_logits, lse_sum = pl.pallas_call(
        _mask_lm_head_kernel,
        out_shape=(jax.ShapeDtypeStruct((batch, v_pad), jnp.float32),
                   jax.ShapeDtypeStruct((batch, 1), jnp.float32)),
        grid_spec=pltpu.PrefetchScalarGridSpec(
            num_scalar_prefetch=0,
            grid=grid,
            in_specs=[
                pl.BlockSpec((M, H), lambda j: (0, 0)),        # mask rows, resident
                pl.BlockSpec((H, tv), lambda j: (0, j)),       # weight tile, streamed
                pl.BlockSpec((1, tv), lambda j: (0, j)),       # bias tile
            ],
            out_specs=(
                pl.BlockSpec((batch, tv), lambda j: (0, j)),   # raw-logit sums
                pl.BlockSpec((batch, 1), lambda j: (0, 0)),    # lse sums (accumulator)
            ),
            scratch_shapes=[pltpu.VMEM((M, 1), jnp.float32),
                            pltpu.VMEM((M, 1), jnp.float32)],
        ),
        compiler_params=pltpu.CompilerParams(
            # The single grid axis carries the logsumexp reduction -> sequential.
            dimension_semantics=("arbitrary",),
            vmem_limit_bytes=32 * 1024 * 1024,
        ),
    )(h, w, b)

    # log_softmax + per-batch mask-row sum:
    #   sum_r (logits[r, v] - lse[r]) = sum_logits[b, v] - lse_sum[b]
    return sum_logits[:, :V] - lse_sum


class PrefixPEFTModelPallas:
    """JAX/Pallas re-implementation of PrefixPEFTModel.forward (prefix branch)."""

    def __init__(self, mask_token_id, positive_token_ids, negative_token_ids,
                 vocab_size, hidden_size, with_answer_weights=False, seed=0):
        self.mask_token_id = mask_token_id
        self.positive_token_ids = jnp.asarray(positive_token_ids, jnp.int32)
        self.negative_token_ids = jnp.asarray(negative_token_ids, jnp.int32)
        self.vocab_size = vocab_size
        self.hidden_size = hidden_size

        key = jax.random.PRNGKey(seed)
        k_emb, k_w, k_b, k_pw, k_nw = jax.random.split(key, 5)
        # Synthetic stand-in for the PEFT/RoBERTa backbone: an embedding table.
        self.embed = jax.random.normal(k_emb, (vocab_size, hidden_size),
                                       jnp.float32) * 0.02
        # lm_head (trainable in the original module).
        self.lm_w = jax.random.normal(k_w, (hidden_size, vocab_size),
                                      jnp.float32) * 0.02
        self.lm_b = jax.random.normal(k_b, (vocab_size,), jnp.float32) * 0.02
        if with_answer_weights:
            self.positive_weights = jax.random.uniform(
                k_pw, (len(positive_token_ids),), jnp.float32)
            self.negative_weights = jax.random.uniform(
                k_nw, (len(negative_token_ids),), jnp.float32)
        else:
            self.positive_weights = jnp.ones((len(positive_token_ids),), jnp.float32)
            self.negative_weights = jnp.ones((len(negative_token_ids),), jnp.float32)

    def forward(self, input_ids, attention_mask, labels, type="eval"):
        B, S = input_ids.shape
        mask_bool = (input_ids == self.mask_token_id)

        # The original torch code (nonzero + view(B, mask_num, V)) assumes every
        # example has the same number (>= 1) of <mask> tokens.
        mask_counts = jnp.sum(mask_bool, axis=1)
        mask_num = int(mask_counts[0])
        assert mask_num >= 1, "every example must contain at least one <mask> token"
        assert bool(jnp.all(mask_counts == mask_num)), \
            "all examples must contain the same number of <mask> tokens"

        # Per-example mask positions in sequence order (stable sort puts masks first).
        mask_pos = jnp.argsort((~mask_bool).astype(jnp.int32), axis=1)[:, :mask_num]

        # --- backbone stand-in (glue); only mask rows are materialized ---
        # TODO(synk): real RoBERTa-large + prefix-tuning backbone not reproducible;
        #             attention_mask is unused by this stand-in.
        mask_tokens = jnp.take_along_axis(input_ids, mask_pos, axis=1)   # (B, mask_num)
        hidden_rows = self.embed[mask_tokens].reshape(B * mask_num, self.hidden_size)

        # --- hot path in Pallas: lm-head matmul + streaming log_softmax + mask sum ---
        mask_logits = masked_logsoftmax_sum(hidden_rows, self.lm_w, self.lm_b, B)  # (B, V)

        # --- verbalizer head (glue; tiny gathers) ---
        positive_weight = jax.nn.softmax(self.positive_weights, axis=0)
        negative_weight = jax.nn.softmax(self.negative_weights, axis=0)
        positive_logits = jnp.sum(
            mask_logits[:, self.positive_token_ids] * positive_weight,
            axis=1, keepdims=True)                                       # (B, 1)
        negative_logits = jnp.sum(
            mask_logits[:, self.negative_token_ids] * negative_weight,
            axis=1, keepdims=True)                                       # (B, 1)
        logits = jnp.concatenate([negative_logits, positive_logits], axis=1)  # (B, 2)

        # TODO(synk): loss_1 / loss_2 (train_SC / train_NLI) need the backbone's
        #             attention maps; default (eval) path leaves them at 0.
        loss_1 = jnp.zeros((), jnp.float32)
        loss_2 = jnp.zeros((), jnp.float32)

        # Cross-entropy (mean reduction, matching torch.nn.CrossEntropyLoss).
        logp = jax.nn.log_softmax(logits, axis=-1)
        loss_3 = -jnp.mean(logp[jnp.arange(B), labels])
        loss = 0.7 * loss_3 + 0.15 * loss_1 + 0.15 * loss_2
        return logits, loss, loss_1, loss_2, loss_3


if __name__ == "__main__":
    B, S, H, V = 2, 16, 32, 128
    MASK_ID = 5
    POS_IDS = [7, 11]
    NEG_IDS = [3, 9]

    key = jax.random.PRNGKey(0)
    k_ids, _ = jax.random.split(key)
    input_ids = jax.random.randint(k_ids, (B, S), 0, V, dtype=jnp.int32)
    # Remove accidental mask tokens, then plant exactly one <mask> per example.
    input_ids = jnp.where(input_ids == MASK_ID, MASK_ID + 1, input_ids)
    input_ids = input_ids.at[:, 3].set(MASK_ID)

    attention_mask = jnp.ones((B, S), jnp.int32)
    labels = jnp.array([0, 1], jnp.int32)

    model = PrefixPEFTModelPallas(MASK_ID, POS_IDS, NEG_IDS,
                                  vocab_size=V, hidden_size=H,
                                  with_answer_weights=False, seed=0)

    logits, loss, loss_1, loss_2, loss_3 = model.forward(
        input_ids, attention_mask, labels, type="eval")
    jax.block_until_ready((logits, loss, loss_1, loss_2, loss_3))

    assert logits.shape == (B, 2)
    assert bool(jnp.isfinite(loss))
    print("KERNEL_OK")
</pallas_src>

<mosaic_0001>
module attributes {stable_mosaic.version = 11 : i64} {
  func.func @_mask_lm_head_kernel(%arg0: i32, %arg1: memref<2x32xbf16, #tpu.memory_space<vmem>>, %arg2: memref<32x128xbf16, #tpu.memory_space<vmem>>, %arg3: memref<1x128xf32, #tpu.memory_space<vmem>>, %arg4: memref<2x128xf32, #tpu.memory_space<vmem>>, %arg5: memref<2x1xf32, #tpu.memory_space<vmem>>, %arg6: memref<2x1xf32, #tpu.memory_space<vmem>>, %arg7: memref<2x1xf32, #tpu.memory_space<vmem>>) attributes {dimension_semantics = [#tpu.dimension_semantics<arbitrary>], iteration_bounds = array<i64: 1>, scalar_prefetch = 0 : i64, scratch_operands = 2 : i64, tpu.core_type = #tpu.core_type<tc>, window_params = [{pipeline_mode = #tpu.pipeline_mode<synchronous>, transform_indices = @transform_0, window_bounds = array<i64: 2, 32>}, {transform_indices = @transform_1, window_bounds = array<i64: 32, 128>}, {transform_indices = @transform_2, window_bounds = array<i64: 1, 128>}, {transform_indices = @transform_3, window_bounds = array<i64: 2, 128>}, {pipeline_mode = #tpu.pipeline_mode<synchronous>, transform_indices = @transform_4, window_bounds = array<i64: 2, 1>}]} {
    %c0_i32 = arith.constant 0 : i32
    %0 = arith.cmpi eq, %arg0, %c0_i32 : i32
    %1 = arith.extui %0 : i1 to i32
    %c0_i32_0 = arith.constant 0 : i32
    %2 = arith.cmpi ne, %1, %c0_i32_0 : i32
    scf.if %2 {
      %cst_22 = arith.constant 0xFF800000 : f32
      %30 = vector.broadcast %cst_22 : f32 to vector<2x1xf32>
      %c0_23 = arith.constant 0 : index
      %c0_24 = arith.constant 0 : index
      %31 = vector.load %arg6[%c0_23, %c0_24] : memref<2x1xf32, #tpu.memory_space<vmem>>, vector<2x1xf32>
      tpu.vector_store %arg6[%c0_23, %c0_24], %30 {strides = array<i32>} : memref<2x1xf32, #tpu.memory_space<vmem>>, vector<2x1xf32>,
      %cst_25 = arith.constant 0.000000e+00 : f32
      %32 = vector.broadcast %cst_25 : f32 to vector<2x1xf32>
      %c0_26 = arith.constant 0 : index
      %c0_27 = arith.constant 0 : index
      %33 = vector.load %arg7[%c0_26, %c0_27] : memref<2x1xf32, #tpu.memory_space<vmem>>, vector<2x1xf32>
      tpu.vector_store %arg7[%c0_26, %c0_27], %32 {strides = array<i32>} : memref<2x1xf32, #tpu.memory_space<vmem>>, vector<2x1xf32>,
    } else {
    }
    %c0 = arith.constant 0 : index
    %c0_1 = arith.constant 0 : index
    %3 = vector.load %arg1[%c0, %c0_1] : memref<2x32xbf16, #tpu.memory_space<vmem>>, vector<2x32xbf16>
    %c0_2 = arith.constant 0 : index
    %c0_3 = arith.constant 0 : index
    %4 = vector.load %arg2[%c0_2, %c0_3] : memref<32x128xbf16, #tpu.memory_space<vmem>>, vector<32x128xbf16>
    %cst = arith.constant dense<0.000000e+00> : vector<2x128xf32>
    %5 = tpu.matmul %3, %4, %cst {dimension_numbers = #tpu.dot_dimension_numbers<[1], [0], [0], [1], [0, 0, 1, 1], [], []>} : vector<2x32xbf16>, vector<32x128xbf16>, vector<2x128xf32> -> vector<2x128xf32>
    %c0_4 = arith.constant 0 : index
    %c0_5 = arith.constant 0 : index
    %6 = vector.load %arg3[%c0_4, %c0_5] : memref<1x128xf32, #tpu.memory_space<vmem>>, vector<1x128xf32>
    %7 = vector.broadcast %6 : vector<1x128xf32> to vector<2x128xf32>
    %8 = arith.addf %5, %7 : vector<2x128xf32>
    %cst_6 = arith.constant dense<0xFF800000> : vector<2xf32>
    %9 = vector.multi_reduction <maximumf>, %8, %cst_6 [1] : vector<2x128xf32> to vector<2xf32>
    %10 = vector.shape_cast %9 : vector<2xf32> to vector<2x1xf32>
    %c0_7 = arith.constant 0 : index
    %c0_8 = arith.constant 0 : index
    %11 = vector.load %arg6[%c0_7, %c0_8] : memref<2x1xf32, #tpu.memory_space<vmem>>, vector<2x1xf32>
    %12 = arith.maximumf %11, %10 : vector<2x1xf32>
    %c0_9 = arith.constant 0 : index
    %c0_10 = arith.constant 0 : index
    %13 = vector.load %arg7[%c0_9, %c0_10] : memref<2x1xf32, #tpu.memory_space<vmem>>, vector<2x1xf32>
    %c0_11 = arith.constant 0 : index
    %c0_12 = arith.constant 0 : index
    %14 = vector.load %arg6[%c0_11, %c0_12] : memref<2x1xf32, #tpu.memory_space<vmem>>, vector<2x1xf32>
    %15 = arith.subf %14, %12 : vector<2x1xf32>
    %16 = math.exp %15 : vector<2x1xf32>
    %17 = arith.mulf %13, %16 : vector<2x1xf32>
    %18 = vector.broadcast %12 : vector<2x1xf32> to vector<2x128xf32>
    %19 = arith.subf %8, %18 : vector<2x128xf32>
    %20 = math.exp %19 : vector<2x128xf32>
    %cst_13 = arith.constant dense<0.000000e+00> : vector<2xf32>
    %21 = vector.multi_reduction <add>, %20, %cst_13 [1] : vector<2x128xf32> to vector<2xf32>
    %22 = vector.shape_cast %21 : vector<2xf32> to vector<2x1xf32>
    %23 = arith.addf %17, %22 : vector<2x1xf32>
    %c0_14 = arith.constant 0 : index
    %c0_15 = arith.constant 0 : index
    %24 = vector.load %arg7[%c0_14, %c0_15] : memref<2x1xf32, #tpu.memory_space<vmem>>, vector<2x1xf32>
    tpu.vector_store %arg7[%c0_14, %c0_15], %23 {strides = array<i32>} : memref<2x1xf32, #tpu.memory_space<vmem>>, vector<2x1xf32>,
    %c0_16 = arith.constant 0 : index
    %c0_17 = arith.constant 0 : index
    %25 = vector.load %arg6[%c0_16, %c0_17] : memref<2x1xf32, #tpu.memory_space<vmem>>, vector<2x1xf32>
    tpu.vector_store %arg6[%c0_16, %c0_17], %12 {strides = array<i32>} : memref<2x1xf32, #tpu.memory_space<vmem>>, vector<2x1xf32>,
    %c0_18 = arith.constant 0 : index
    %c0_19 = arith.constant 0 : index
    %26 = vector.load %arg4[%c0_18, %c0_19] : memref<2x128xf32, #tpu.memory_space<vmem>>, vector<2x128xf32>
    tpu.vector_store %arg4[%c0_18, %c0_19], %8 {strides = array<i32>} : memref<2x128xf32, #tpu.memory_space<vmem>>, vector<2x128xf32>,
    %c0_i32_20 = arith.constant 0 : i32
    %27 = arith.cmpi eq, %arg0, %c0_i32_20 : i32
    %28 = arith.extui %27 : i1 to i32
    %c0_i32_21 = arith.constant 0 : i32
    %29 = arith.cmpi ne, %28, %c0_i32_21 : i32
    scf.if %29 {
      %c0_22 = arith.constant 0 : index
      %c0_23 = arith.constant 0 : index
      %30 = vector.load %arg6[%c0_22, %c0_23] : memref<2x1xf32, #tpu.memory_space<vmem>>, vector<2x1xf32>
      %c0_24 = arith.constant 0 : index
      %c0_25 = arith.constant 0 : index
      %31 = vector.load %arg7[%c0_24, %c0_25] : memref<2x1xf32, #tpu.memory_space<vmem>>, vector<2x1xf32>
      %32 = math.log %31 : vector<2x1xf32>
      %33 = arith.addf %30, %32 : vector<2x1xf32>
      %c0_26 = arith.constant 0 : index
      %c0_27 = arith.constant 0 : index
      %34 = vector.load %arg5[%c0_26, %c0_27] : memref<2x1xf32, #tpu.memory_space<vmem>>, vector<2x1xf32>
      tpu.vector_store %arg5[%c0_26, %c0_27], %33 {strides = array<i32>} : memref<2x1xf32, #tpu.memory_space<vmem>>, vector<2x1xf32>,
    } else {
    }
    return
  }
  func.func @transform_0(%arg0: i32) -> (i32, i32) {
    %c0_i32 = arith.constant 0 : i32
    %c0_i32_0 = arith.constant 0 : i32
    %c0_i32_1 = arith.constant 0 : i32
    return %c0_i32, %c0_i32_0 : i32, i32
  }
  func.func @transform_1(%arg0: i32) -> (i32, i32) {
    %c0_i32 = arith.constant 0 : i32
    %c0_i32_0 = arith.constant 0 : i32
    return %c0_i32, %arg0 : i32, i32
  }
  func.func @transform_2(%arg0: i32) -> (i32, i32) {
    %c0_i32 = arith.constant 0 : i32
    %c0_i32_0 = arith.constant 0 : i32
    return %c0_i32, %arg0 : i32, i32
  }
  func.func @transform_3(%arg0: i32) -> (i32, i32) {
    %c0_i32 = arith.constant 0 : i32
    %c0_i32_0 = arith.constant 0 : i32
    return %c0_i32, %arg0 : i32, i32
  }
  func.func @transform_4(%arg0: i32) -> (i32, i32) {
    %c0_i32 = arith.constant 0 : i32
    %c0_i32_0 = arith.constant 0 : i32
    %c0_i32_1 = arith.constant 0 : i32
    return %c0_i32, %c0_i32_0 : i32, i32
  }
}

</mosaic_0001>

<bundles_post_ra>
// kernel: tpu_custom_call.1
= control target key start
LH: loop header
LB: loop body
LE: loop exit
PB: predicated region body
PF: predicated region fallthrough
CT: control target
= control target key end

     0   :  { %10 = vsyncpa [#allocation5], 0  ;;  %s370_s0 = inlined_call_operand.hbm [shape: bf16[2,32], index: 0, kind: input, shape index: {}]   ;;  %s371_s1 = inlined_call_operand.hbm [shape: bf16[32,128], index: 1, kind: input, shape index: {}]   ;;  %s372_s2 = inlined_call_operand.vmem [shape: f32[1,128], index: 2, kind: input, shape index: {}]   ;;  %s373_s3 = inlined_call_operand.hbm [shape: f32[2,128], index: 3, kind: output, shape index: {0}]   ;;  %s374_s4 = inlined_call_operand.vmem [shape: f32[2,1], index: 4, kind: output, shape index: {1}]  }
   0x1   :  { %11 = vsyncpa [#allocation8], 0 }
   0x2   :  { %12 = vsyncpa [#allocation6], 0  ;;  %s280_s15 = smov [#allocation4]   ;;  %s281_s17 = smov [#allocation7]  }
   0x3   :  { %s19_s16 = sshll.u32 %s280_s15, 4  ;;  %s28_s18 = sshll.u32 %s281_s17, 4  ;;  %s20_s16 = int_to_ptr.vmem [resolvable:$true] %s19_s16  ;;  %s314_s18 = int_to_ptr.vmem [resolvable:$true] %s28_s18 }
   0x4   :  { %s208_s21 = scalar_lea.hbm %s370_s0, 16 }
   0x5   :  { %p209_p0 = scmp.ne.s32.totalorder %s370_s0, %s208_s21  ;;  %p212_p1 = scmp.lt.u32.totalorder %s208_s21, %s370_s0 }
   0x7   :  { %p214_p2 = pnand %p212_p1, %p209_p0 }
   0x9   :  { %217 = shalt.err (!%p214_p2)
}
   0xa   :  { %s218_s26 = scalar_lea.vmem %s20_s16, 16  ;;  %s222_s27 = scalar_lea.vmem %s20_s16, 32 }
   0xb   :  { %p219_p3 = scmp.ne.s32.totalorder %s20_s16, %s218_s26  ;;  %p223_p4 = scmp.lt.s32.totalorder %s20_s16, %s20_s16 }
   0xc   :  { %p224_p5 = scmp.lt.s32.totalorder %s222_s27, %s218_s26 }
   0xe   :  { %p225_p6 = por %p224_p5, %p223_p4 }
  0x10   :  { %p226_p7 = pnand %p225_p6, %p219_p3 }
  0x12   :  { %229 = shalt.err (!%p226_p7)
}
  0x13   :  { %22 = dma.hbm_to_vmem [thread:$0]  %s370_s0, 16, %s20_s16, [#allocation5]  }
  0x14   :  { %s230_s6 = scalar_lea.hbm %s371_s1, 256 }
  0x15   :  { %p231_p8 = scmp.ne.s32.totalorder %s371_s1, %s230_s6  ;;  %p234_p9 = scmp.lt.u32.totalorder %s230_s6, %s371_s1 }
  0x17   :  { %p236_p10 = pnand %p234_p9, %p231_p8 }
  0x19   :  { %239 = shalt.err (!%p236_p10)
}
  0x1a   :  { %s240_s11 = scalar_lea.vmem %s314_s18, 256  ;;  %p245_p12 = scmp.lt.s32.totalorder %s314_s18, %s314_s18 }
  0x1b   :  { %p241_p11 = scmp.ne.s32.totalorder %s314_s18, %s240_s11  ;;  %p246_p13 = scmp.lt.s32.totalorder %s240_s11, %s240_s11 }
  0x1d   :  { %p247_p0 = por %p246_p13, %p245_p12 }
  0x1f   :  { %p248_p1 = pnand %p247_p0, %p241_p11 }
  0x21   :  { %251 = shalt.err (!%p248_p1)
}
  0x22   :  { %s282_s0 = smov 64   ;;  %s283_s12 = smov 4  }
  0x23   :  { %34 = dma.hbm_to_vmem [thread:$0]  %s371_s1, 256, %s314_s18, [#allocation8], %s282_s0, %s282_s0, %s283_s12  }
  0x24   :  { %274 = dma.done.wait [#allocation5], 16  }
  0x25   :  { %275 = vsyncadd [#allocation5], 4294967280 }
  0x26   :  { %276 = dma.done.wait [#allocation8], 256  }
  0x27   :  { %277 = vsyncadd [#allocation8], 4294967040  ;;  %vm48_vm0 = vcmask 1024   ;;  %v284_v0 = vmov 0.0   ;;  %vm285_vm1 = vmmov 0   ;;  %v200_v1 = vld [vmem:[#allocation7] sm:$0xff]  }
  0x28   :  { %50 = vst.msk [vmem:[#allocation3] sm:$0x3] %vm48_vm0, %v284_v0  ;;  %182 = vmatprep.subr.bf16.mxu0 %v284_v0  ;;  %186 = vmatprep.mubr.msk.bf16.mxu0 %vm285_vm1, %v284_v0  ;;  %v201_v2 = vld [vmem:[#allocation7 + $0x8] sm:$0xff]   ;;  %v51_v3 = vld [vmem:[#allocation4] sm:$0x1]  ;;  %vm75_vm2 = vcmask 261120  }
  0x29   :  { %183 = vmatpush3.bf16.msra.mxu0 %v200_v1  ;;  %v286_v4 = vmov -inf   ;;  %v175_v5 = vld [vmem:[%s372_s2] ss:$0 sm:$0xff]  ;;  %vm119_vm3 = vcmask 1041408   ;;  %v287_v12 = vmov 0   ;;  %s288_s2 = smov [#allocation9]  }
  0x2a   :  { %184 = vmatprep.subr.bf16.mxu0 %v284_v0  ;;  %49 = vst.msk [vmem:[#allocation2] sm:$0x3] %vm48_vm0, %v286_v4  ;;  %199 = vset.pattern.permute.xlu0 %v287_v12  ;;  %s161_s16 = sshll.u32 %s288_s2, 4  ;;  %s162_s16 = int_to_ptr.vmem [resolvable:$true] %s161_s16 }
  0x2b   :  { %s252_s17 = scalar_lea.vmem %s162_s16, 32  ;;  %p257_p3 = scmp.lt.s32.totalorder %s162_s16, %s162_s16 }
  0x2c   :  { %p253_p2 = scmp.ne.s32.totalorder %s162_s16, %s252_s17  ;;  %p258_p4 = scmp.lt.s32.totalorder %s252_s17, %s252_s17 }
  0x2d   :  { %185 = vmatpush3.bf16.msra.mxu0 %v201_v2 }
  0x2e   :  { %p259_p5 = por %p258_p4, %p257_p3 }
  0x30   :  { %187 = vmatmul.mubr.msk.bf16.vlgmr.msra.gmra.mrb[0].mxu0 %vm75_vm2, %v51_v3  ;;  %p260_p6 = pnand %p259_p5, %p253_p2 }
  0x31   :  { %v123_v13 = vld [vmem:[#allocation2] sm:$0x3] }
 0x103   :  { %v113_v6 = vpop.f32.mrb[0].mxu0 }
 0x104   :  { %v114_v7 = vadd.f32 %v175_v5, %v113_v6  ;;  %v188_v8 = vpop.f32.mrb[1].mxu0 }
 0x105   :  { %v116_v9 = vpop.f32.mrb[2].mxu0 }
 0x106   :  { %145 = vst [vmem:[#allocation9] sm:$0x3] %v114_v7  ;;  %v189_v10 = vpop.f32.mrb[3].mxu0  ;;  %v120_v11 = vsel %vm119_vm3, %v114_v7, -inf }
 0x107   :  { %121 = vmax.xlane.f32.xlu0 %v120_v11 }
 0x194   :  { %v122_v14 = vpop.xlane.xlu0 %121 }
 0x195   :  { %v124_v15 = vmax.f32 %v123_v13, %v122_v14 }
 0x197   :  { %v126_v16 = vsub.f32 %v123_v13, %v124_v15  ;;  %144 = vst.msk [vmem:[#allocation2] sm:$0x3] %vm48_vm0, %v124_v15  ;;  %132 = vperm.xlu0 %199, %v124_v15  }
 0x216   :  { %v133_v17 = vpop.permute.xlu0 %132 }
 0x217   :  { %v135_v18 = vsub.f32 %v114_v7, %v133_v17 }
 0x219   :  { %v136_v19 = vmul.f32 1.442695, %v135_v18 }
 0x21b   :  { %202 = vpow2.f32 %v136_v19 }
 0x225   :  { %v203_v20 = vpop.eup %202 }
 0x226   :  { %v138_v21 = vsel %vm119_vm3, %v203_v20, 0.0 }
 0x227   :  { %139 = vadd.xlane.f32.xlu1 %v138_v21 }
 0x228   :  { %263 = shalt.err (!%p260_p6)
}
 0x229   :  { %s264_s20 = scalar_lea.hbm %s373_s3, 32 }
 0x22a   :  { %p265_p7 = scmp.ne.s32.totalorder %s373_s3, %s264_s20  ;;  %p268_p8 = scmp.lt.u32.totalorder %s264_s20, %s373_s3 }
 0x22c   :  { %p270_p9 = pnand %p268_p8, %p265_p7 }
 0x22e   :  { %273 = shalt.err (!%p270_p9)
}
 0x22f   :  { %164 = dma.vmem_to_hbm [thread:$0]  %s162_s16, 32, %s373_s3, [#allocation6]   ;;  %v127_v22 = vmul.f32 1.442695, %v126_v16  ;;  %v125_v24 = vld [vmem:[#allocation3] sm:$0x3] }
 0x230   :  { %v149_v31 = vld [vmem:[#allocation2] sm:$0x3] }
 0x231   :  { %204 = vpow2.f32 %v127_v22 }
 0x23b   :  { %v205_v23 = vpop.eup %204 }
 0x23c   :  { %v129_v25 = vmul.f32 %v205_v23, %v125_v24 }
 0x2b4   :  { %v140_v26 = vpop.xlane.xlu1 %139 }
 0x2b5   :  { %v141_v27 = vadd.f32 %v140_v26, %v129_v25 }
 0x2b7   :  { %143 = vst.msk [vmem:[#allocation3] sm:$0x3] %vm48_vm0, %v141_v27 }
 0x2be   :  { %v150_v28 = vld [vmem:[#allocation3] sm:$0x3] }
 0x2bf   :  { %206 = vlog2.f32 %v150_v28 }
 0x2c9   :  { %v207_v29 = vpop.eup %206 }
 0x2ca   :  { %v152_v30 = vmul.f32 0.6931472, %v207_v29 }
 0x2cc   :  { %v153_v32 = vadd.f32 %v152_v30, %v149_v31 }
 0x2ce   :  { %154 = vst.msk [vmem:[%s374_s4] sm:$0x3] %vm48_vm0, %v153_v32 }
 0x2cf   :  { %278 = dma.done.wait [#allocation6], 32  }
 0x2d0   :  { %279 = vsyncadd [#allocation6], 4294967264 }
 0x2d1   :  { %172 = vsyncpa [#allocation5], 1 }
 0x2d2   :  { %173 = vsyncpa [#allocation8], 1 }
 0x2d3   :  { %174 = vsyncpa [#allocation6], 1 }

</bundles_post_ra>
